<compile_context>
chip_gen: v7x
topology: tpu7x:2x2x1
jax: 0.10.0
libtpu: 0.0.40
codegen_flags: <defaults>
</compile_context>

<pallas_src>
import jax
import jax.numpy as jnp
from jax import lax
from jax.experimental import pallas as pl
from jax.experimental.pallas import tpu as pltpu


def _round_up(x, m):
    return ((x + m - 1) // m) * m


def _vmem_capacity_bytes():
    try:
        return int(pltpu.get_tpu_info().vmem_capacity_bytes)
    except Exception:
        return 64 * 1024 * 1024  # conservative default (v7x per-TensorCore VMEM)


# --------------------------------------------------------------------------- #
# Kernels
# --------------------------------------------------------------------------- #
def _make_axw_kernel(tk, n_valid, mask_k):
    """out_tile = A_tile @ B, accumulated over K tiles (B = x @ sum_i W_i, row-padded)."""

    def kernel(adj_ref, b_ref, out_ref):
        k = pl.program_id(1)

        @pl.when(k == 0)
        def _init():
            out_ref[...] = jnp.zeros_like(out_ref)

        a = adj_ref[...]
        if mask_k:
            # Zero the ragged tail of the contraction so OOB adjacency garbage
            # (which may be NaN) never contaminates valid output rows.
            col = k * tk + lax.broadcasted_iota(jnp.int32, a.shape, 1)
            a = jnp.where(col < n_valid, a, 0.0)
        out_ref[...] += jnp.dot(a, b_ref[...], preferred_element_type=jnp.float32)

    return kernel


def _make_ax_w_kernel(tk, n_valid, mask_k):
    """acc = A_tile @ x accumulated over K tiles; out_tile = acc @ W at the last K step."""

    def kernel(adj_ref, x_ref, w_ref, out_ref, acc_ref):
        k = pl.program_id(1)

        @pl.when(k == 0)
        def _init():
            acc_ref[...] = jnp.zeros_like(acc_ref)

        a = adj_ref[...]
        if mask_k:
            col = k * tk + lax.broadcasted_iota(jnp.int32, a.shape, 1)
            a = jnp.where(col < n_valid, a, 0.0)
        acc_ref[...] += jnp.dot(a, x_ref[...], preferred_element_type=jnp.float32)

        @pl.when(k == pl.num_programs(1) - 1)
        def _finalize():
            out_ref[...] = jnp.dot(
                acc_ref[...], w_ref[...], preferred_element_type=jnp.float32
            )

    return kernel


# --------------------------------------------------------------------------- #
# Wrapper
# --------------------------------------------------------------------------- #
def gt_layer_forward(x, adjacency, weight, *, use_pallas=None, tm=None, tk=None):
    """Pallas implementation of GTLayer.forward.

    tm / tk (optional) override the row / contraction tile sizes; if given, tm
    must be a multiple of 8 and tk a multiple of 128 (both <= n_nodes).
    """
    n_nodes, in_channels = x.shape
    out_channels = weight.shape[-1]

    x = x.astype(jnp.float32)
    adjacency = adjacency.astype(jnp.float32)

    # Collapse the edge loop (cheap XLA op).  num_edge == 0 -> zero weights.
    w_sum = jnp.sum(weight.astype(jnp.float32), axis=0)  # (in, out)

    # Small-problem cutoff: kernel/pipeline overhead beats the win for tiny graphs.
    if use_pallas is None:
        use_pallas = not (n_nodes <= 512 and max(in_channels, out_channels) <= 128)
    if not use_pallas:
        return (adjacency @ x) @ w_sum

    # ---- channel padding (lane-dense output stores) ------------------------
    co_pad = _round_up(out_channels, 128)
    ci_pad_mxu = _round_up(in_channels, 128)
    reassociate = co_pad <= ci_pad_mxu  # A @ (x @ W)  vs  (A @ x) @ W
    if co_pad != out_channels:
        w_sum = jnp.pad(w_sum, ((0, 0), (0, co_pad - out_channels)))

    # ---- tile selection (per-generation VMEM budget) ------------------------
    phys = _vmem_capacity_bytes()
    budget = int(phys * 0.4)
    tm_target = 512 if phys >= (100 << 20) else 256  # v5e/v6e: 128 MiB phys; v7x: 64 MiB
    tk_target = 512

    if tk is None:
        tk = n_nodes if n_nodes <= tk_target else tk_target  # full dim OR multiple of 128
    if tm is None:
        tm_auto = True
        tm = n_nodes if n_nodes <= tm_target else tm_target  # full dim OR multiple of 8
    else:
        tm_auto = False

    def _footprint(tm_, tk_):
        f = 2 * tm_ * tk_ + 2 * tm_ * co_pad  # adjacency strip + output (double-buffered)
        if reassociate:
            f += 2 * tk_ * co_pad              # xw tiles
        else:
            f += 2 * tk_ * in_channels + 2 * in_channels * co_pad + tm_ * in_channels
        return 4 * f

    if tm_auto:
        while _footprint(tm, tk) > budget and tm > 8:
            tm = max(8, _round_up(tm // 2, 8))
    fp = _footprint(tm, tk)
    vmem_limit = int(min(phys * 0.9, max(32 << 20, 2 * fp + (4 << 20))))

    # ---- grid / ragged-K handling -------------------------------------------
    n_row_tiles = pl.cdiv(n_nodes, tm)
    nk = pl.cdiv(n_nodes, tk)
    k_pad = nk * tk
    mask_k = k_pad != n_nodes  # ragged contraction tail -> in-kernel mask + cheap row pad
    grid = (n_row_tiles, nk)

    # ---- operands / specs ----------------------------------------------------
    if reassociate:
        b = x @ w_sum  # (n_nodes, co_pad) -- tiny vs. the n^2 matmul
        if mask_k:
            b = jnp.pad(b, ((0, k_pad - n_nodes), (0, 0)))  # true zeros in the K tail
        kernel = _make_axw_kernel(tk, n_nodes, mask_k)
        in_specs = [
            pl.BlockSpec((tm, tk), lambda i, k: (i, k)),        # adjacency row/col tile
            pl.BlockSpec((tk, co_pad), lambda i, k: (k, 0)),    # xw K tile
        ]
        operands = (adjacency, b)
        scratch = []
        flops = 2 * n_nodes * n_nodes * co_pad
        bytes_acc = 4 * (n_nodes * n_nodes + k_pad * co_pad + n_nodes * co_pad)
    else:
        xp = x
        if mask_k:
            xp = jnp.pad(xp, ((0, k_pad - n_nodes), (0, 0)))
        kernel = _make_ax_w_kernel(tk, n_nodes, mask_k)
        in_specs = [
            pl.BlockSpec((tm, tk), lambda i, k: (i, k)),              # adjacency tile
            pl.BlockSpec((tk, in_channels), lambda i, k: (k, 0)),     # x K tile
            pl.BlockSpec((in_channels, co_pad), lambda i, k: (0, 0)),  # resident W
        ]
        operands = (adjacency, xp, w_sum)
        scratch = [pltpu.VMEM((tm, in_channels), jnp.float32)]
        flops = 2 * n_nodes * n_nodes * in_channels + 2 * n_nodes * in_channels * co_pad
        bytes_acc = 4 * (
            n_nodes * n_nodes
            + k_pad * in_channels
            + in_channels * co_pad
            + n_nodes * co_pad
        )

    cost = pl.CostEstimate(flops=flops, transcendentals=0, bytes_accessed=bytes_acc)

    out_p = pl.pallas_call(
        kernel,
        out_shape=jax.ShapeDtypeStruct((n_nodes, co_pad), jnp.float32),
        grid_spec=pltpu.PrefetchScalarGridSpec(
            num_scalar_prefetch=0,
            grid=grid,
            in_specs=in_specs,
            out_specs=pl.BlockSpec((tm, co_pad), lambda i, k: (i, 0)),
            scratch_shapes=scratch,
        ),
        compiler_params=pltpu.CompilerParams(
            # row tiles are independent -> shard across TensorCores on v7x;
            # K (reduction) axis last, marked arbitrary.
            dimension_semantics=("parallel", "arbitrary"),
            vmem_limit_bytes=vmem_limit,
        ),
        cost_estimate=cost,
    )(*operands)

    if co_pad != out_channels:
        out_p = out_p[:, :out_channels]
    return out_p


def xavier_uniform(key, shape):
    # nn.init.xavier_uniform_ on (num_edge, in, out): fan from the last two dims.
    fan_in, fan_out = shape[-2], shape[-1]
    bound = (6.0 / (fan_in + fan_out)) ** 0.5
    return jax.random.uniform(key, shape, jnp.float32, minval=-bound, maxval=bound)


# --------------------------------------------------------------------------- #
# Self-test
# --------------------------------------------------------------------------- #
if __name__ == "__main__":
    def reference(x, adjacency, weight):
        ax = adjacency @ x
        out = jnp.zeros((x.shape[0], weight.shape[-1]), jnp.float32)
        for i in range(weight.shape[0]):
            out = out + ax @ weight[i]
        return out

    key = jax.random.PRNGKey(0)

    # Case 1: small shapes, single-tile, reassociated (out <= in) kernel path.
    k1, k2, k3, key = jax.random.split(key, 4)
    n, ci, co, ne = 16, 8, 8, 2
    x = jax.random.normal(k1, (n, ci), jnp.float32)
    adj = jax.random.normal(k2, (n, n), jnp.float32)
    w = xavier_uniform(k3, (ne, ci, co))
    out = jax.block_until_ready(gt_layer_forward(x, adj, w, use_pallas=True))
    ref = reference(x, adj, w)
    assert out.shape == (n, co), "case1: bad output shape"
    assert jnp.allclose(out, ref, atol=2e-3, rtol=2e-3), "case1: mismatch vs reference"

    # Case 2: ragged row & K tiles, non-reassociated (out > in) kernel path.
    k1, k2, k3, key = jax.random.split(key, 4)
    n, ci, co, ne = 200, 8, 160, 3
    x = jax.random.normal(k1, (n, ci), jnp.float32)
    adj = jax.random.normal(k2, (n, n), jnp.float32)
    w = xavier_uniform(k3, (ne, ci, co))
    out = jax.block_until_ready(gt_layer_forward(x, adj, w, use_pallas=True, tm=64, tk=128))
    ref = reference(x, adj, w)
    assert out.shape == (n, co), "case2: bad output shape"
    assert jnp.allclose(out, ref, atol=2e-3, rtol=2e-3), "case2: mismatch vs reference"

    # Case 3: ragged row & K tiles, reassociated path (out <= in).
    k1, k2, k3, key = jax.random.split(key, 4)
    n, ci, co, ne = 200, 96, 32, 2
    x = jax.random.normal(k1, (n, ci), jnp.float32)
    adj = jax.random.normal(k2, (n, n), jnp.float32)
    w = xavier_uniform(k3, (ne, ci, co))
    out = jax.block_until_ready(gt_layer_forward(x, adj, w, use_pallas=True, tm=64, tk=128))
    ref = reference(x, adj, w)
    assert out.shape == (n, co), "case3: bad output shape"
    assert jnp.allclose(out, ref, atol=2e-3, rtol=2e-3), "case3: mismatch vs reference"

    # Case 4: default dispatch (tiny -> XLA fallback) and num_edge == 0 -> zeros.
    k1, k2, key = jax.random.split(key, 3)
    n, ci, co = 16, 8, 8
    x = jax.random.normal(k1, (n, ci), jnp.float32)
    adj = jax.random.normal(k2, (n, n), jnp.float32)
    w0 = jnp.zeros((0, ci, co), jnp.float32)
    out = jax.block_until_ready(gt_layer_forward(x, adj, w0))
    assert out.shape == (n, co) and jnp.allclose(out, 0.0), "case4: num_edge=0 not zeros"

    print("KERNEL_OK")
</pallas_src>

<mosaic_0001>
module attributes {stable_mosaic.version = 11 : i64} {
  func.func @kernel(%arg0: i32, %arg1: i32, %arg2: memref<16x16xf32, #tpu.memory_space<vmem>>, %arg3: memref<16x128xf32, #tpu.memory_space<vmem>>, %arg4: memref<16x128xf32, #tpu.memory_space<vmem>>) attributes {dimension_semantics = [#tpu.dimension_semantics<parallel>, #tpu.dimension_semantics<arbitrary>], iteration_bounds = array<i64: 1, 1>, scalar_prefetch = 0 : i64, scratch_operands = 0 : i64, tpu.core_type = #tpu.core_type<tc>, window_params = [{transform_indices = @transform_0, window_bounds = array<i64: 16, 16>}, {transform_indices = @transform_1, window_bounds = array<i64: 16, 128>}, {transform_indices = @transform_2, window_bounds = array<i64: 16, 128>}]} {
    %c0_i32 = arith.constant 0 : i32
    %0 = arith.cmpi eq, %arg1, %c0_i32 : i32
    %1 = arith.extui %0 : i1 to i32
    %c0_i32_0 = arith.constant 0 : i32
    %2 = arith.cmpi ne, %1, %c0_i32_0 : i32
    scf.if %2 {
      %cst_8 = arith.constant 0.000000e+00 : f32
      %9 = vector.broadcast %cst_8 : f32 to vector<16x128xf32>
      %c0_9 = arith.constant 0 : index
      %c0_10 = arith.constant 0 : index
      %10 = vector.load %arg4[%c0_9, %c0_10] : memref<16x128xf32, #tpu.memory_space<vmem>>, vector<16x128xf32>
      tpu.vector_store %arg4[%c0_9, %c0_10], %9 {strides = array<i32>} : memref<16x128xf32, #tpu.memory_space<vmem>>, vector<16x128xf32>,
    } else {
    }
    %c0 = arith.constant 0 : index
    %c0_1 = arith.constant 0 : index
    %3 = vector.load %arg2[%c0, %c0_1] : memref<16x16xf32, #tpu.memory_space<vmem>>, vector<16x16xf32>
    %c0_2 = arith.constant 0 : index
    %c0_3 = arith.constant 0 : index
    %4 = vector.load %arg4[%c0_2, %c0_3] : memref<16x128xf32, #tpu.memory_space<vmem>>, vector<16x128xf32>
    %c0_4 = arith.constant 0 : index
    %c0_5 = arith.constant 0 : index
    %5 = vector.load %arg3[%c0_4, %c0_5] : memref<16x128xf32, #tpu.memory_space<vmem>>, vector<16x128xf32>
    %cst = arith.constant dense<0.000000e+00> : vector<16x128xf32>
    %6 = tpu.matmul %3, %5, %cst {dimension_numbers = #tpu.dot_dimension_numbers<[1], [0], [0], [1], [0, 0, 1, 1], [], []>} : vector<16x16xf32>, vector<16x128xf32>, vector<16x128xf32> -> vector<16x128xf32>
    %7 = arith.addf %4, %6 : vector<16x128xf32>
    %c0_6 = arith.constant 0 : index
    %c0_7 = arith.constant 0 : index
    %8 = vector.load %arg4[%c0_6, %c0_7] : memref<16x128xf32, #tpu.memory_space<vmem>>, vector<16x128xf32>
    tpu.vector_store %arg4[%c0_6, %c0_7], %7 {strides = array<i32>} : memref<16x128xf32, #tpu.memory_space<vmem>>, vector<16x128xf32>,
    return
  }
  func.func @transform_0(%arg0: i32, %arg1: i32) -> (i32, i32) {
    %c0_i32 = arith.constant 0 : i32
    return %arg0, %arg1 : i32, i32
  }
  func.func @transform_1(%arg0: i32, %arg1: i32) -> (i32, i32) {
    %c0_i32 = arith.constant 0 : i32
    %c0_i32_0 = arith.constant 0 : i32
    return %arg1, %c0_i32 : i32, i32
  }
  func.func @transform_2(%arg0: i32, %arg1: i32) -> (i32, i32) {
    %c0_i32 = arith.constant 0 : i32
    %c0_i32_0 = arith.constant 0 : i32
    return %arg0, %c0_i32 : i32, i32
  }
}

</mosaic_0001>

<bundles_post_ra>
// kernel: tpu_custom_call.1
= control target key start
LH: loop header
LB: loop body
LE: loop exit
PB: predicated region body
PF: predicated region fallthrough
CT: control target
= control target key end

     0   :  { %7 = vsyncpa [#allocation3], 0  ;;  %s316_s0 = inlined_call_operand.hbm [shape: f32[16,16], index: 0, kind: input, shape index: {}]   ;;  %s317_s1 = inlined_call_operand.hbm [shape: f32[16,128], index: 1, kind: input, shape index: {}]   ;;  %s318_s2 = inlined_call_operand.hbm [shape: f32[16,128], index: 2, kind: output, shape index: {}]  }
   0x1   :  { %8 = vsyncpa [#allocation6], 0 }
   0x2   :  { %9 = vsyncpa [#allocation4], 0  ;;  %s251_s9 = smov [#allocation2]   ;;  %s179_s13 = scalar_lea.hbm %s316_s0, 256 }
   0x3   :  { %s15_s10 = sshll.u32 %s251_s9, 4  ;;  %p180_p0 = scmp.ne.s32.totalorder %s316_s0, %s179_s13  ;;  %s16_s10 = int_to_ptr.vmem [resolvable:$true] %s15_s10 }
   0x4   :  { %p183_p1 = scmp.lt.u32.totalorder %s179_s13, %s316_s0 }
   0x6   :  { %p185_p2 = pnand %p183_p1, %p180_p0 }
   0x8   :  { %188 = shalt.err (!%p185_p2)
}
   0x9   :  { %s189_s18 = scalar_lea.vmem %s16_s10, 256  ;;  %p194_p4 = scmp.lt.s32.totalorder %s16_s10, %s16_s10 }
   0xa   :  { %p190_p3 = scmp.ne.s32.totalorder %s16_s10, %s189_s18  ;;  %p195_p5 = scmp.lt.s32.totalorder %s189_s18, %s189_s18 }
   0xc   :  { %p196_p6 = por %p195_p5, %p194_p4 }
   0xe   :  { %p197_p7 = pnand %p196_p6, %p190_p3 }
  0x10   :  { %200 = shalt.err (!%p197_p7)
}
  0x11   :  { %s252_s19 = smov 128   ;;  %s253_s20 = smov 8  }
  0x12   :  { %21 = dma.hbm_to_vmem [thread:$0]  %s316_s0, 256, %s16_s10, [#allocation3], %s252_s19, %s252_s19, %s253_s20  }
  0x13   :  { %s254_s23 = smov [#allocation5]   ;;  %s201_s27 = scalar_lea.hbm %s317_s1, 256 }
  0x14   :  { %s27_s24 = sshll.u32 %s254_s23, 4  ;;  %p202_p8 = scmp.ne.s32.totalorder %s317_s1, %s201_s27  ;;  %s28_s24 = int_to_ptr.vmem [resolvable:$true] %s27_s24 }
  0x15   :  { %p205_p9 = scmp.lt.u32.totalorder %s201_s27, %s317_s1 }
  0x17   :  { %p207_p10 = pnand %p205_p9, %p202_p8 }
  0x19   :  { %210 = shalt.err (!%p207_p10)
}
  0x1a   :  { %s211_s4 = scalar_lea.vmem %s28_s24, 256  ;;  %p216_p12 = scmp.lt.s32.totalorder %s28_s24, %s28_s24 }
  0x1b   :  { %p212_p11 = scmp.ne.s32.totalorder %s28_s24, %s211_s4  ;;  %p217_p13 = scmp.lt.s32.totalorder %s211_s4, %s211_s4 }
  0x1d   :  { %p218_p0 = por %p217_p13, %p216_p12 }
  0x1f   :  { %p219_p1 = pnand %p218_p0, %p212_p11 }
  0x21   :  { %222 = shalt.err (!%p219_p1)
}
  0x22   :  { %33 = dma.hbm_to_vmem [thread:$0]  %s317_s1, 256, %s28_s24, [#allocation6], %s252_s19, %s252_s19, %s253_s20  }
  0x23   :  { %245 = dma.done.wait [#allocation3], 256  }
  0x24   :  { %246 = vsyncadd [#allocation3], 4294967040 }
  0x25   :  { %247 = dma.done.wait [#allocation6], 256  }
  0x26   :  { %248 = vsyncadd [#allocation6], 4294967040  ;;  %vm52_vm0 = vcmask 130048   ;;  %v50_v0 = vld [vmem:[#allocation5] sm:$0xff]  ;;  %v51_v1 = vld [vmem:[#allocation5 + $0x8] sm:$0xff]  ;;  %s255_s6 = smov [#allocation7]  }
  0x27   :  { %v46_v2 = vld [vmem:[#allocation2] sm:$0xff]  ;;  %v169_v3 = vpack.c.bf16 %v51_v1, %v50_v0  ;;  %v47_v4 = vld [vmem:[#allocation2 + $0x8] sm:$0xff]  ;;  %s143_s7 = sshll.u32 %s255_s6, 4  ;;  %s144_s7 = int_to_ptr.vmem [resolvable:$true] %s143_s7 }
  0x28   :  { %166 = vmatprep.mubr.msk.f32.mxu0 %vm52_vm0, %v46_v2  ;;  %s223_s1 = scalar_lea.vmem %s144_s7, 256  ;;  %p228_p3 = scmp.lt.s32.totalorder %s144_s7, %s144_s7 }
  0x29   :  { %170 = vmatprep.subr.bf16.mxu0 %v169_v3  ;;  %p224_p2 = scmp.ne.s32.totalorder %s144_s7, %s223_s1  ;;  %p229_p4 = scmp.lt.s32.totalorder %s223_s1, %s223_s1 }
  0x2a   :  { %172 = vmatpush3.bf16.msra.mxu0 %v169_v3 }
  0x2b   :  { %p230_p5 = por %p229_p4, %p228_p3 }
  0x2d   :  { %167 = vmatmul.mubr.msk.f32.vlgmr.msra.gmra.mrb[0].mxu0 %vm52_vm0, %v47_v4  ;;  %p231_p6 = pnand %p230_p5, %p224_p2 }
 0x100   :  { %v168_v5 = vpop.f32.mrb[0].mxu0 }
 0x101   :  { %v125_v6 = vpop.f32.mrb[1].mxu0  ;;  %137 = vst [vmem:[#allocation7 + $0x8] sm:$0xff] %v168_v5 }
 0x102   :  { %136 = vst [vmem:[#allocation7] sm:$0xff] %v125_v6 }
 0x103   :  { %234 = shalt.err (!%p231_p6)
}
 0x104   :  { %s235_s10 = scalar_lea.hbm %s318_s2, 256 }
 0x105   :  { %p236_p7 = scmp.ne.s32.totalorder %s318_s2, %s235_s10  ;;  %p239_p8 = scmp.lt.u32.totalorder %s235_s10, %s318_s2 }
 0x107   :  { %p241_p9 = pnand %p239_p8, %p236_p7 }
 0x109   :  { %244 = shalt.err (!%p241_p9)
}
 0x10a   :  { %149 = dma.vmem_to_hbm [thread:$0]  %s144_s7, 256, %s318_s2, [#allocation4], %s252_s19, %s252_s19, %s253_s20  }
 0x10b   :  { %249 = dma.done.wait [#allocation4], 256  }
 0x10c   :  { %250 = vsyncadd [#allocation4], 4294967040 }
 0x10d   :  { %153 = vsyncpa [#allocation3], 1 }
 0x10e   :  { %154 = vsyncpa [#allocation6], 1 }
 0x10f   :  { %155 = vsyncpa [#allocation4], 1 }

</bundles_post_ra>
